<compile_context>
chip_gen: v7x
topology: tpu7x:2x2x1
jax: 0.10.0
libtpu: 0.0.40
codegen_flags: <defaults>
</compile_context>

<pallas_src>
import jax
import jax.numpy as jnp
from jax.experimental import pallas as pl
from jax.experimental.pallas import tpu as pltpu


def fair_decoder_kernel(z_ref, s_ref, wz_ref, ws_ref, b_ref, o_ref):
    # z_ref : (TILE_N, latent_dim)   f32   -- native layout batch tile
    # s_ref : (TILE_N, 1)            f32   -- the .view(-1, 1) of s
    # wz_ref: (latent_dim, out_dim)  bf16  -- z-part of Linear weight, pre-transposed
    # ws_ref: (1, out_dim)           f32   -- s-column of the Linear weight
    # b_ref : (1, out_dim)           f32   -- bias
    # o_ref : (TILE_N, out_dim)      out dtype (PyTorch layout)
    z_bf = z_ref[...].astype(jnp.bfloat16)              # in-kernel cast (hidden under DMA)
    acc = jnp.dot(z_bf, wz_ref[...],
                  preferred_element_type=jnp.float32)    # MXU matmul, f32 accumulate
    acc = acc + s_ref[...] * ws_ref[...]                 # VPU outer product for the s column
    acc = acc + b_ref[...]
    o_ref[...] = acc.astype(o_ref.dtype)


def fair_decoder(z, s, weight, bias, *, tile_n=16384):
    """z: (N, latent_dim), s: (N,) or (N, 1),
    weight: (output_dim, latent_dim + 1) (PyTorch Linear layout), bias: (output_dim,).
    Returns (N, output_dim) in z's dtype, matching the PyTorch forward."""
    N, latent_dim = z.shape
    out_dim = weight.shape[0]
    out_dtype = z.dtype

    # Batch tile: multiple of 8 sublanes, capped for small N.
    n_ceil8 = ((N + 7) // 8) * 8
    tile_n = max(8, min(int(tile_n), n_ceil8))
    tile_n = ((tile_n + 7) // 8) * 8
    grid = (pl.cdiv(N, tile_n),)

    # --- parameter-sized plumbing only (batch arrays stay untouched in HBM) ---
    s2 = s.reshape(-1, 1).astype(jnp.float32)                  # (N, 1), layout no-op
    wz_t = weight[:, :latent_dim].T.astype(jnp.bfloat16)       # (latent, out), tiny
    ws_row = weight[:, latent_dim:].T.astype(jnp.float32)      # (1, out)
    b_row = bias.reshape(1, -1).astype(jnp.float32)            # (1, out)

    bytes_accessed = int(
        z.size * z.dtype.itemsize                # z read
        + N * 4                                  # s read
        + N * out_dim * jnp.dtype(out_dtype).itemsize   # output write
        + (latent_dim * out_dim) * 2 + out_dim * 8       # resident params
    )
    cost = pl.CostEstimate(
        flops=2 * N * (latent_dim + 1) * out_dim,
        transcendentals=0,
        bytes_accessed=bytes_accessed,
    )

    return pl.pallas_call(
        fair_decoder_kernel,
        out_shape=jax.ShapeDtypeStruct((N, out_dim), out_dtype),
        grid_spec=pltpu.PrefetchScalarGridSpec(
            num_scalar_prefetch=0,
            grid=grid,
            in_specs=[
                pl.BlockSpec((tile_n, latent_dim), lambda i: (i, 0)),
                pl.BlockSpec((tile_n, 1), lambda i: (i, 0)),
                # Weights / bias: constant block index -> DMA'd once, VMEM-resident.
                pl.BlockSpec((latent_dim, out_dim), lambda i: (0, 0)),
                pl.BlockSpec((1, out_dim), lambda i: (0, 0)),
                pl.BlockSpec((1, out_dim), lambda i: (0, 0)),
            ],
            out_specs=pl.BlockSpec((tile_n, out_dim), lambda i: (i, 0)),
        ),
        compiler_params=pltpu.CompilerParams(
            # Batch tiles are independent -> shard across both TCs on v7x.
            dimension_semantics=("parallel",),
        ),
        cost_estimate=cost,
    )(z, s2, wz_t, ws_row, b_row)


if __name__ == "__main__":
    # Small shapes consistent with the module: batch=8, latent_dim=32, output_dim=16.
    N, LATENT, OUT = 8, 32, 16

    key = jax.random.PRNGKey(0)
    kz, ks, kw, kb = jax.random.split(key, 4)

    z = jax.random.normal(kz, (N, LATENT), dtype=jnp.float32)
    s = jax.random.bernoulli(ks, 0.5, (N,)).astype(jnp.float32)  # sensitive attribute

    # Deterministic parameter init (mimics PyTorch Linear default U(-1/sqrt(fan_in), 1/sqrt(fan_in)))
    fan_in = LATENT + 1
    bound = 1.0 / jnp.sqrt(jnp.float32(fan_in))
    weight = jax.random.uniform(kw, (OUT, LATENT + 1), jnp.float32, -bound, bound)
    bias = jax.random.uniform(kb, (OUT,), jnp.float32, -bound, bound)

    out = fair_decoder(z, s, weight, bias)
    out = jax.block_until_ready(out)

    # Pure-JAX f32 reference of the PyTorch forward.
    x_cat = jnp.concatenate([z, s.reshape(-1, 1)], axis=1)
    ref = x_cat @ weight.T + bias
    assert out.shape == (N, OUT)
    # bf16 MXU inputs -> compare at bf16-appropriate tolerance.
    assert jnp.allclose(out, ref, atol=3e-2, rtol=3e-2), "mismatch vs reference"

    # Secondary check: multi-tile grid with a ragged last block (N % tile_n != 0).
    N2 = 300
    kz2, ks2 = jax.random.split(jax.random.PRNGKey(1))
    z2 = jax.random.normal(kz2, (N2, LATENT), dtype=jnp.float32)
    s2 = jax.random.bernoulli(ks2, 0.5, (N2,)).astype(jnp.float32)
    out2 = jax.block_until_ready(fair_decoder(z2, s2, weight, bias, tile_n=128))
    ref2 = jnp.concatenate([z2, s2.reshape(-1, 1)], axis=1) @ weight.T + bias
    assert out2.shape == (N2, OUT)
    assert jnp.allclose(out2, ref2, atol=3e-2, rtol=3e-2), "ragged-block mismatch vs reference"

    print("KERNEL_OK")
</pallas_src>

<mosaic_0001>
module attributes {stable_mosaic.version = 11 : i64} {
  func.func @fair_decoder_kernel(%arg0: i32, %arg1: memref<8x32xf32, #tpu.memory_space<vmem>>, %arg2: memref<8x1xf32, #tpu.memory_space<vmem>>, %arg3: memref<32x16xbf16, #tpu.memory_space<vmem>>, %arg4: memref<1x16xf32, #tpu.memory_space<vmem>>, %arg5: memref<1x16xf32, #tpu.memory_space<vmem>>, %arg6: memref<8x16xf32, #tpu.memory_space<vmem>>) attributes {dimension_semantics = [#tpu.dimension_semantics<parallel>], iteration_bounds = array<i64: 1>, scalar_prefetch = 0 : i64, scratch_operands = 0 : i64, tpu.core_type = #tpu.core_type<tc>, window_params = [{transform_indices = @transform_0, window_bounds = array<i64: 8, 32>}, {transform_indices = @transform_1, window_bounds = array<i64: 8, 1>}, {pipeline_mode = #tpu.pipeline_mode<synchronous>, transform_indices = @transform_2, window_bounds = array<i64: 32, 16>}, {pipeline_mode = #tpu.pipeline_mode<synchronous>, transform_indices = @transform_3, window_bounds = array<i64: 1, 16>}, {pipeline_mode = #tpu.pipeline_mode<synchronous>, transform_indices = @transform_4, window_bounds = array<i64: 1, 16>}, {transform_indices = @transform_5, window_bounds = array<i64: 8, 16>}]} {
    %c0 = arith.constant 0 : index
    %c0_0 = arith.constant 0 : index
    %0 = vector.load %arg1[%c0, %c0_0] : memref<8x32xf32, #tpu.memory_space<vmem>>, vector<8x32xf32>
    %1 = arith.truncf %0 : vector<8x32xf32> to vector<8x32xbf16>
    %c0_1 = arith.constant 0 : index
    %c0_2 = arith.constant 0 : index
    %2 = vector.load %arg3[%c0_1, %c0_2] : memref<32x16xbf16, #tpu.memory_space<vmem>>, vector<32x16xbf16>
    %cst = arith.constant dense<0.000000e+00> : vector<8x16xf32>
    %3 = tpu.matmul %1, %2, %cst {dimension_numbers = #tpu.dot_dimension_numbers<[1], [0], [0], [1], [0, 0, 1, 1], [], []>} : vector<8x32xbf16>, vector<32x16xbf16>, vector<8x16xf32> -> vector<8x16xf32>
    %c0_3 = arith.constant 0 : index
    %c0_4 = arith.constant 0 : index
    %4 = vector.load %arg2[%c0_3, %c0_4] : memref<8x1xf32, #tpu.memory_space<vmem>>, vector<8x1xf32>
    %c0_5 = arith.constant 0 : index
    %c0_6 = arith.constant 0 : index
    %5 = vector.load %arg4[%c0_5, %c0_6] : memref<1x16xf32, #tpu.memory_space<vmem>>, vector<1x16xf32>
    %6 = vector.broadcast %4 : vector<8x1xf32> to vector<8x16xf32>
    %7 = vector.broadcast %5 : vector<1x16xf32> to vector<8x16xf32>
    %8 = arith.mulf %6, %7 : vector<8x16xf32>
    %9 = arith.addf %3, %8 : vector<8x16xf32>
    %c0_7 = arith.constant 0 : index
    %c0_8 = arith.constant 0 : index
    %10 = vector.load %arg5[%c0_7, %c0_8] : memref<1x16xf32, #tpu.memory_space<vmem>>, vector<1x16xf32>
    %11 = vector.broadcast %10 : vector<1x16xf32> to vector<8x16xf32>
    %12 = arith.addf %9, %11 : vector<8x16xf32>
    %c0_9 = arith.constant 0 : index
    %c0_10 = arith.constant 0 : index
    %13 = vector.load %arg6[%c0_9, %c0_10] : memref<8x16xf32, #tpu.memory_space<vmem>>, vector<8x16xf32>
    tpu.vector_store %arg6[%c0_9, %c0_10], %12 {strides = array<i32>} : memref<8x16xf32, #tpu.memory_space<vmem>>, vector<8x16xf32>,
    return
  }
  func.func @transform_0(%arg0: i32) -> (i32, i32) {
    %c0_i32 = arith.constant 0 : i32
    %c0_i32_0 = arith.constant 0 : i32
    return %arg0, %c0_i32 : i32, i32
  }
  func.func @transform_1(%arg0: i32) -> (i32, i32) {
    %c0_i32 = arith.constant 0 : i32
    %c0_i32_0 = arith.constant 0 : i32
    return %arg0, %c0_i32 : i32, i32
  }
  func.func @transform_2(%arg0: i32) -> (i32, i32) {
    %c0_i32 = arith.constant 0 : i32
    %c0_i32_0 = arith.constant 0 : i32
    %c0_i32_1 = arith.constant 0 : i32
    return %c0_i32, %c0_i32_0 : i32, i32
  }
  func.func @transform_3(%arg0: i32) -> (i32, i32) {
    %c0_i32 = arith.constant 0 : i32
    %c0_i32_0 = arith.constant 0 : i32
    %c0_i32_1 = arith.constant 0 : i32
    return %c0_i32, %c0_i32_0 : i32, i32
  }
  func.func @transform_4(%arg0: i32) -> (i32, i32) {
    %c0_i32 = arith.constant 0 : i32
    %c0_i32_0 = arith.constant 0 : i32
    %c0_i32_1 = arith.constant 0 : i32
    return %c0_i32, %c0_i32_0 : i32, i32
  }
  func.func @transform_5(%arg0: i32) -> (i32, i32) {
    %c0_i32 = arith.constant 0 : i32
    %c0_i32_0 = arith.constant 0 : i32
    return %arg0, %c0_i32 : i32, i32
  }
}

</mosaic_0001>

<bundles_post_ra>
// kernel: tpu_custom_call.1
= control target key start
LH: loop header
LB: loop body
LE: loop exit
PB: predicated region body
PF: predicated region fallthrough
CT: control target
= control target key end

     0   :  { %v169_v1 = vmov 0.0   ;;  %vm170_vm0 = vmmov 0   ;;  %v171_v5 = vmov 0   ;;  %s233_s0 = inlined_call_operand.vmem [shape: f32[8,32], index: 0, kind: input, shape index: {}]   ;;  %s234_s1 = inlined_call_operand.vmem [shape: f32[8,1], index: 1, kind: input, shape index: {}]   ;;  %s235_s2 = inlined_call_operand.vmem [shape: bf16[32,16], index: 2, kind: input, shape index: {}]   ;;  %s236_s3 = inlined_call_operand.vmem [shape: f32[1,16], index: 3, kind: input, shape index: {}]   ;;  %s237_s4 = inlined_call_operand.vmem [shape: f32[1,16], index: 4, kind: input, shape index: {}]   ;;  %s238_s5 = inlined_call_operand.hbm [shape: f32[8,16], index: 5, kind: output, shape index: {}]  }
   0x1   :  { %v143_v0 = vld [vmem:[%s235_s2] sm:$0xff]   ;;  %130 = vmatprep.subr.bf16.mxu0 %v169_v1  ;;  %v144_v2 = vld [vmem:[%s235_s2 + $0x8] sm:$0xff]   ;;  %134 = vmatprep.mubr.msk.bf16.mxu0 %vm170_vm0, %v169_v1 }
   0x2   :  { %131 = vmatpush3.bf16.msra.mxu0 %v143_v0  ;;  %v22_v3 = vld [vmem:[%s233_s0] sm:$0xff]  ;;  %142 = vset.pattern.permute.xlu0 %v171_v5 }
   0x3   :  { %v28_v4 = vld [vmem:[%s234_s1] sm:$0xff]  ;;  %132 = vmatprep.subr.bf16.mxu0 %v169_v1 }
   0x4   :  { %10 = vsyncpa [#allocation3], 0  ;;  %32 = vperm.xlu0 %142, %v28_v4   ;;  %v23_v6 = vpack.c.bf16 %v22_v3, %v22_v3  ;;  %vm54_vm1 = vcmask 261120   ;;  %v122_v7 = vld [vmem:[%s236_s3] ss:$0 sm:$0xff]  ;;  %s172_s1 = smov [#allocation2]  }
   0x5   :  { %v126_v11 = vld [vmem:[%s237_s4] ss:$0 sm:$0xff]  ;;  %s114_s28 = sshll.u32 %s172_s1, 4  ;;  %vm106_vm2 = vcmask 130048   ;;  %s115_s28 = int_to_ptr.vmem [resolvable:$true] %s114_s28 }
   0x6   :  { %133 = vmatpush3.bf16.msra.mxu0 %v144_v2  ;;  %s145_s29 = scalar_lea.vmem %s115_s28, 128  ;;  %p150_p1 = scmp.lt.s32.totalorder %s115_s28, %s115_s28 }
   0x7   :  { %p146_p0 = scmp.ne.s32.totalorder %s115_s28, %s145_s29  ;;  %p151_p2 = scmp.lt.s32.totalorder %s145_s29, %s145_s29 }
   0x9   :  { %135 = vmatmul.mubr.msk.bf16.vlgmr.msra.gmra.mrb[0].mxu0 %vm54_vm1, %v23_v6  ;;  %p152_p3 = por %p151_p2, %p150_p1 }
   0xb   :  { %p153_p4 = pnand %p152_p3, %p146_p0 }
  0x83   :  { %v33_v8 = vpop.permute.xlu0 %32 }
  0x84   :  { %v41_v9 = vmul.f32 %v122_v7, %v33_v8 }
  0xdc   :  { %v92_v10 = vpop.f32.mrb[0].mxu0 }
  0xdd   :  { %v93_v12 = vadd.f32 %v92_v10, %v41_v9  ;;  %v136_v13 = vpop.f32.mrb[1].mxu0 }
  0xde   :  { %v95_v14 = vpop.f32.mrb[2].mxu0 }
  0xdf   :  { %v105_v15 = vadd.f32 %v126_v11, %v93_v12  ;;  %v137_v16 = vpop.f32.mrb[3].mxu0 }
  0xe1   :  { %107 = vst.msk [vmem:[#allocation2] sm:$0xff] %vm106_vm2, %v105_v15 }
  0xe2   :  { %156 = shalt.err (!%p153_p4)
}
  0xe3   :  { %s157_s4 = scalar_lea.hbm %s238_s5, 128 }
  0xe4   :  { %p158_p5 = scmp.ne.s32.totalorder %s238_s5, %s157_s4  ;;  %p161_p6 = scmp.lt.u32.totalorder %s157_s4, %s238_s5 }
  0xe6   :  { %p163_p7 = pnand %p161_p6, %p158_p5 }
  0xe8   :  { %166 = shalt.err (!%p163_p7)
}
  0xe9   :  { %117 = dma.vmem_to_hbm [thread:$0]  %s115_s28, 128, %s238_s5, [#allocation3]  }
  0xea   :  { %167 = dma.done.wait [#allocation3], 128  }
  0xeb   :  { %168 = vsyncadd [#allocation3], 4294967168 }
  0xec   :  { %121 = vsyncpa [#allocation3], 1 }

</bundles_post_ra>
